<compile_context>
chip_gen: v7x
topology: tpu7x:2x2x1
jax: 0.10.0
libtpu: 0.0.40
codegen_flags: <defaults>
</compile_context>

<pallas_src>
import functools

import jax
import jax.numpy as jnp
from jax.experimental import pallas as pl
from jax.experimental.pallas import tpu as pltpu


def _broadcast_dma_kernel(q_ref, out_hbm, buf, sem, *, tb, grid_len, num_full, rem):
    """Fill `buf` with the broadcast queries once, then stream it to HBM.

    q_ref  : (1, nq*dq) VMEM tile of the learned queries (lane-dense).
    out_hbm: (batch, nq*dq) raw HBM ref (memory_space=pl.ANY).
    buf    : (tb, nq*dq) persistent VMEM scratch, filled once at step 0.
    sem    : (2,) DMA semaphores -> up to two output DMAs in flight.
    """
    b = pl.program_id(0)

    # One-time fill of the persistent output buffer.  The grid runs
    # sequentially ("arbitrary"), so step 0 always executes first.
    @pl.when(b == 0)
    def _fill():
        buf[...] = jnp.broadcast_to(q_ref[...], buf.shape)

    # Retire the DMA issued two steps ago before reusing its semaphore slot.
    # (Steps 0..grid_len-2 are always full tiles; only the last can be partial.)
    if grid_len > 2:
        @pl.when(b >= 2)
        def _wait_older():
            prev = jnp.maximum(b - 2, 0) * tb
            pltpu.make_async_copy(
                buf, out_hbm.at[pl.ds(prev, tb)], sem.at[b % 2]
            ).wait()

    # Issue this step's output DMA (full tile, or the partial last tile).
    if rem == 0:
        pltpu.make_async_copy(
            buf, out_hbm.at[pl.ds(b * tb, tb)], sem.at[b % 2]
        ).start()
    else:
        @pl.when(b < num_full)
        def _full():
            pltpu.make_async_copy(
                buf, out_hbm.at[pl.ds(b * tb, tb)], sem.at[b % 2]
            ).start()

        @pl.when(b == num_full)
        def _partial():
            pltpu.make_async_copy(
                buf.at[pl.ds(0, rem)],
                out_hbm.at[pl.ds(b * tb, rem)],
                sem.at[b % 2],
            ).start()

    # Drain: the last step waits for the (at most two) DMAs still in flight.
    @pl.when(b == grid_len - 1)
    def _drain():
        if grid_len >= 2:
            # Second-to-last step is always a full tile.
            pltpu.make_async_copy(
                buf,
                out_hbm.at[pl.ds((grid_len - 2) * tb, tb)],
                sem.at[(grid_len - 2) % 2],
            ).wait()
        last_rows = tb if rem == 0 else rem
        pltpu.make_async_copy(
            buf.at[pl.ds(0, last_rows)],
            out_hbm.at[pl.ds((grid_len - 1) * tb, last_rows)],
            sem.at[(grid_len - 1) % 2],
        ).wait()


def _vmem_capacity_bytes() -> int:
    try:
        return int(pltpu.get_tpu_info().vmem_capacity_bytes)
    except Exception:
        return 64 * 1024 * 1024  # conservative fallback: v7x per-TC VMEM


def _pick_batch_tile(batch_size: int, row_bytes: int) -> int:
    """Size the single persistent output buffer from the chip's VMEM capacity.

    Only ONE buffer is allocated (no output double-buffering with the manual
    DMA scheme), so we can safely take ~1/3 of physical VMEM (capped at
    28 MiB), leaving headroom for the small input tile and internal scratch.
    """
    capacity = _vmem_capacity_bytes()
    budget = min(capacity // 3, 28 * 1024 * 1024)
    tb = max(1, budget // max(1, row_bytes))
    tb = min(tb, batch_size)
    if tb >= 8:                      # sublane-friendly fill / DMA when possible
        tb = (tb // 8) * 8
    return int(tb)


def learned_queries_forward(query_tokens: jax.Array, batch_size: int,
                            block_batch: int | None = None) -> jax.Array:
    """query_tokens: (1, nq, dq) -> (batch_size, nq, dq) (torch .expand)."""
    assert query_tokens.ndim == 3 and query_tokens.shape[0] == 1
    num_queries, dim_queries = query_tokens.shape[1], query_tokens.shape[2]
    flat = num_queries * dim_queries
    dtype = query_tokens.dtype
    itemsize = jnp.dtype(dtype).itemsize
    row_bytes = flat * itemsize

    # Lane-dense 2-D views (metadata-only reshapes for contiguous arrays).
    q_flat = query_tokens.reshape(1, flat)

    if block_batch is None:
        tb = _pick_batch_tile(batch_size, row_bytes)
    else:
        tb = max(1, min(int(block_batch), batch_size))

    num_full, rem = divmod(batch_size, tb)
    grid_len = num_full + (1 if rem else 0)

    kernel = functools.partial(
        _broadcast_dma_kernel, tb=tb, grid_len=grid_len, num_full=num_full, rem=rem
    )

    capacity = _vmem_capacity_bytes()
    vmem_limit = tb * row_bytes + 2 * row_bytes + (8 << 20)
    vmem_limit = int(max(16 << 20, min(vmem_limit, (capacity * 3) // 4)))

    out_flat = pl.pallas_call(
        kernel,
        out_shape=jax.ShapeDtypeStruct((batch_size, flat), dtype),
        grid_spec=pltpu.PrefetchScalarGridSpec(
            num_scalar_prefetch=0,
            grid=(grid_len,),
            in_specs=[
                # Same (full) query row for every grid step.
                pl.BlockSpec((1, flat), lambda b: (0, 0)),
            ],
            # Raw HBM ref for the output; the kernel DMAs into it manually.
            out_specs=pl.BlockSpec(memory_space=pl.ANY),
            scratch_shapes=[
                pltpu.VMEM((tb, flat), dtype),
                pltpu.SemaphoreType.DMA((2,)),
            ],
        ),
        compiler_params=pltpu.CompilerParams(
            # Fill-once-at-step-0 requires sequential grid execution.
            dimension_semantics=("arbitrary",),
            vmem_limit_bytes=vmem_limit,
        ),
        cost_estimate=pl.CostEstimate(
            flops=0,
            transcendentals=0,
            bytes_accessed=batch_size * row_bytes + row_bytes,
        ),
    )(q_flat)

    return out_flat.reshape(batch_size, num_queries, dim_queries)


class LearnedQueries:
    """JAX/Pallas port of the PyTorch LearnedQueries module."""

    def __init__(self, num_queries=32, dim_queries=768, key=None,
                 dtype=jnp.float32):
        self.num_queries = num_queries
        self.dim_queries = dim_queries
        if key is None:
            key = jax.random.PRNGKey(0)
        # torch.randn -> standard normal init, deterministic via PRNGKey.
        self.query_tokens = jax.random.normal(
            key, (1, num_queries, dim_queries), dtype=dtype
        )

    def __call__(self, batch_size: int) -> jax.Array:
        return learned_queries_forward(self.query_tokens, batch_size)


if __name__ == "__main__":
    # Small, TPU-friendly shapes: num_queries=8 (sublane multiple),
    # dim_queries=128 (lane multiple) -> lane-dense flat dim of 1024.
    key = jax.random.PRNGKey(0)
    module = LearnedQueries(num_queries=8, dim_queries=128, key=key)

    # Case 1: batch=2 — whole batch fits one grid step (G == 1).
    batch_size = 2
    out = jax.block_until_ready(module(batch_size))
    ref = jnp.broadcast_to(module.query_tokens, (batch_size, 8, 128))
    assert out.shape == (batch_size, 8, 128), out.shape
    assert out.dtype == module.query_tokens.dtype
    assert jnp.array_equal(out, ref)

    # Case 2: batch=5 with block_batch=2 — multi-step grid (G=3) with a
    # partial last tile; exercises the 2-deep DMA pipeline + drain paths.
    batch_size = 5
    out = jax.block_until_ready(
        learned_queries_forward(module.query_tokens, batch_size, block_batch=2)
    )
    ref = jnp.broadcast_to(module.query_tokens, (batch_size, 8, 128))
    assert out.shape == (batch_size, 8, 128), out.shape
    assert jnp.array_equal(out, ref)

    print("KERNEL_OK")
</pallas_src>

<mosaic_0001>
module attributes {stable_mosaic.version = 11 : i64} {
  func.func @_broadcast_dma_kernel(%arg0: i32, %arg1: memref<1x1024xf32, #tpu.memory_space<vmem>>, %arg2: memref<2x1024xf32, #tpu.memory_space<any>>, %arg3: memref<2x1024xf32, #tpu.memory_space<vmem>>, %arg4: memref<2x!tpu.dma_semaphore, #tpu.memory_space<semaphore_mem>>) attributes {dimension_semantics = [#tpu.dimension_semantics<arbitrary>], iteration_bounds = array<i64: 1>, scalar_prefetch = 0 : i64, scratch_operands = 2 : i64, tpu.core_type = #tpu.core_type<tc>, window_params = [{pipeline_mode = #tpu.pipeline_mode<synchronous>, transform_indices = @transform_0, window_bounds = array<i64: 1, 1024>}, {}]} {
    %c0_i32 = arith.constant 0 : i32
    %0 = arith.cmpi eq, %arg0, %c0_i32 : i32
    %1 = arith.extui %0 : i1 to i32
    %c0_i32_0 = arith.constant 0 : i32
    %2 = arith.cmpi ne, %1, %c0_i32_0 : i32
    scf.if %2 {
      %c0 = arith.constant 0 : index
      %c0_9 = arith.constant 0 : index
      %20 = vector.load %arg1[%c0, %c0_9] : memref<1x1024xf32, #tpu.memory_space<vmem>>, vector<1x1024xf32>
      %21 = vector.shape_cast %20 : vector<1x1024xf32> to vector<1x1024xf32>
      %22 = vector.broadcast %21 : vector<1x1024xf32> to vector<2x1024xf32>
      %c0_10 = arith.constant 0 : index
      %c0_11 = arith.constant 0 : index
      %23 = vector.load %arg3[%c0_10, %c0_11] : memref<2x1024xf32, #tpu.memory_space<vmem>>, vector<2x1024xf32>
      tpu.vector_store %arg3[%c0_10, %c0_11], %22 {strides = array<i32>} : memref<2x1024xf32, #tpu.memory_space<vmem>>, vector<2x1024xf32>,
    } else {
    }
    %c2_i32 = arith.constant 2 : i32
    %3 = arith.muli %arg0, %c2_i32 : i32
    %c2_i32_1 = arith.constant 2 : i32
    %c0_i32_2 = arith.constant 0 : i32
    %4 = arith.cmpi eq, %c2_i32_1, %c0_i32_2 : i32
    %c1_i32 = arith.constant 1 : i32
    %5 = arith.select %4, %c1_i32, %c2_i32_1 : i32
    %6 = arith.remsi %arg0, %5 : i32
    %c0_i32_3 = arith.constant 0 : i32
    %7 = arith.cmpi ne, %6, %c0_i32_3 : i32
    %c0_i32_4 = arith.constant 0 : i32
    %8 = arith.cmpi slt, %6, %c0_i32_4 : i32
    %c0_i32_5 = arith.constant 0 : i32
    %9 = arith.cmpi slt, %5, %c0_i32_5 : i32
    %10 = arith.xori %8, %9 : i1
    %11 = arith.andi %10, %7 : i1
    %12 = arith.addi %6, %5 : i32
    %13 = arith.select %11, %12, %6 : i32
    %c0_i32_6 = arith.constant 0 : i32
    %14 = tpu.memref_slice %arg2[%3, %c0_i32_6] : memref<2x1024xf32, #tpu.memory_space<any>> -> memref<2x1024xf32, #tpu.memory_space<any>>
    %15 = tpu.memref_slice %arg4[%13] : memref<2x!tpu.dma_semaphore, #tpu.memory_space<semaphore_mem>> -> memref<1x!tpu.dma_semaphore, #tpu.memory_space<semaphore_mem>>
    %16 = tpu.memref_squeeze %15 : memref<1x!tpu.dma_semaphore, #tpu.memory_space<semaphore_mem>> -> memref<!tpu.dma_semaphore, #tpu.memory_space<semaphore_mem>>
    tpu.enqueue_dma source(%arg3 : memref<2x1024xf32, #tpu.memory_space<vmem>>) target(%14 : memref<2x1024xf32, #tpu.memory_space<any>>) target_semaphore(%16 : memref<!tpu.dma_semaphore, #tpu.memory_space<semaphore_mem>>)
    %c0_i32_7 = arith.constant 0 : i32
    %17 = arith.cmpi eq, %arg0, %c0_i32_7 : i32
    %18 = arith.extui %17 : i1 to i32
    %c0_i32_8 = arith.constant 0 : i32
    %19 = arith.cmpi ne, %18, %c0_i32_8 : i32
    scf.if %19 {
      %c0_i32_9 = arith.constant 0 : i32
      %c0_i32_10 = arith.constant 0 : i32
      %c0_i32_11 = arith.constant 0 : i32
      %20 = tpu.memref_slice %arg3[%c0_i32_10, %c0_i32_11] : memref<2x1024xf32, #tpu.memory_space<vmem>> -> memref<2x1024xf32, #tpu.memory_space<vmem>>
      %c0_i32_12 = arith.constant 0 : i32
      %c0_i32_13 = arith.constant 0 : i32
      %21 = tpu.memref_slice %arg2[%c0_i32_12, %c0_i32_13] : memref<2x1024xf32, #tpu.memory_space<any>> -> memref<2x1024xf32, #tpu.memory_space<any>>
      %22 = tpu.memref_slice %arg4[%c0_i32_9] : memref<2x!tpu.dma_semaphore, #tpu.memory_space<semaphore_mem>> -> memref<1x!tpu.dma_semaphore, #tpu.memory_space<semaphore_mem>>
      %23 = tpu.memref_squeeze %22 : memref<1x!tpu.dma_semaphore, #tpu.memory_space<semaphore_mem>> -> memref<!tpu.dma_semaphore, #tpu.memory_space<semaphore_mem>>
      tpu.wait_dma2 semaphore(%23 : memref<!tpu.dma_semaphore, #tpu.memory_space<semaphore_mem>>) src(%20 : memref<2x1024xf32, #tpu.memory_space<vmem>>) dst(%21 : memref<2x1024xf32, #tpu.memory_space<any>>)
    } else {
    }
    return
  }
  func.func @transform_0(%arg0: i32) -> (i32, i32) {
    %c0_i32 = arith.constant 0 : i32
    %c0_i32_0 = arith.constant 0 : i32
    %c0_i32_1 = arith.constant 0 : i32
    return %c0_i32, %c0_i32_0 : i32, i32
  }
}

</mosaic_0001>

<bundles_post_ra>
// kernel: tpu_custom_call.1
= control target key start
LH: loop header
LB: loop body
LE: loop exit
PB: predicated region body
PF: predicated region fallthrough
CT: control target
= control target key end

     0   :  { %6 = vsyncpa [#allocation5], 0  ;;  %s199_s6 = smov [#allocation4]   ;;  %s236_s0 = inlined_call_operand.hbm [shape: f32[1,1024], index: 0, kind: input, shape index: {}]   ;;  %s237_s1 = inlined_call_operand.hbm [shape: f32[2,1024], index: 1, kind: output, shape index: {}]  }
   0x1   :  { %s13_s7 = sshll.u32 %s199_s6, 4  ;;  %s151_s10 = scalar_lea.hbm %s236_s0, 128  ;;  %s14_s7 = int_to_ptr.vmem [resolvable:$true] %s13_s7 }
   0x2   :  { %p152_p0 = scmp.ne.s32.totalorder %s236_s0, %s151_s10  ;;  %p155_p1 = scmp.lt.u32.totalorder %s151_s10, %s236_s0 }
   0x4   :  { %p157_p2 = pnand %p155_p1, %p152_p0 }
   0x6   :  { %160 = shalt.err (!%p157_p2)
}
   0x7   :  { %s161_s15 = scalar_lea.vmem %s14_s7, 128  ;;  %p166_p4 = scmp.lt.s32.totalorder %s14_s7, %s14_s7 }
   0x8   :  { %p162_p3 = scmp.ne.s32.totalorder %s14_s7, %s161_s15  ;;  %p167_p5 = scmp.lt.s32.totalorder %s161_s15, %s161_s15 }
   0xa   :  { %p168_p6 = por %p167_p5, %p166_p4 }
   0xc   :  { %p169_p7 = pnand %p168_p6, %p162_p3 }
   0xe   :  { %172 = shalt.err (!%p169_p7)
}
   0xf   :  { %16 = dma.hbm_to_vmem [thread:$0]  %s236_s0, 128, %s14_s7, [#allocation5]  }
  0x10   :  { %195 = dma.done.wait [#allocation5], 128  }
  0x11   :  { %196 = vsyncadd [#allocation5], 4294967168  ;;  %v26_v0 = vlaneseq  ;;  %v200_v1 = vmov 1983009808   ;;  %v24_v13 = vld [vmem:[#allocation4] sm:$0xff]  ;;  %s201_s0 = smov [#allocation2]  }
  0x12   :  { %v61_v2 = vunpack.c.l.s4 %v200_v1  ;;  %s118_s18 = sshll.u32 %s201_s0, 4  ;;  %s119_s18 = int_to_ptr.vmem [resolvable:$true] %s118_s18 }
  0x13   :  { %v27_v3 = vshrl.u32 %v26_v0, 7  ;;  %s173_s19 = scalar_lea.vmem %s119_s18, 256  ;;  %p178_p9 = scmp.lt.s32.totalorder %s119_s18, %s119_s18 }
  0x14   :  { %v62_v4 = vunpack.c.0.s8 %v61_v2  ;;  %p174_p8 = scmp.ne.s32.totalorder %s119_s18, %s173_s19  ;;  %p179_p10 = scmp.lt.s32.totalorder %s173_s19, %s173_s19 }
  0x15   :  { %v28_v5 = vsub.s32 0, %v27_v3  ;;  %v32_v6 = vsub.s32 1, %v27_v3  ;;  %v36_v7 = vsub.s32 2, %v27_v3  ;;  %v40_v8 = vsub.s32 3, %v27_v3 }
  0x16   :  { %v44_v9 = vsub.s32 4, %v27_v3  ;;  %v48_v10 = vsub.s32 5, %v27_v3  ;;  %v52_v11 = vsub.s32 6, %v27_v3  ;;  %v56_v12 = vsub.s32 7, %v27_v3  ;;  %p180_p11 = por %p179_p10, %p178_p9 }
  0x17   :  { %v65_v14 = vsub.s32 %v62_v4, %v27_v3  ;;  %v29_v15 = vrot.slane %v24_v13, %v28_v5  ;;  %v33_v16 = vrot.slane %v24_v13, %v32_v6  ;;  %v37_v17 = vrot.slane %v24_v13, %v36_v7 }
  0x18   :  { %v41_v18 = vrot.slane %v24_v13, %v40_v8  ;;  %v45_v19 = vrot.slane %v24_v13, %v44_v9  ;;  %v49_v20 = vrot.slane %v24_v13, %v48_v10  ;;  %v53_v21 = vrot.slane %v24_v13, %v52_v11  ;;  %p181_p12 = pnand %p180_p11, %p174_p8 }
  0x19   :  { %v57_v22 = vrot.slane %v24_v13, %v56_v12  ;;  %v58_v23 = vcombine.low %v29_v15, %v33_v16 }
  0x1a   :  { %v59_v24 = vcombine.low %v37_v17, %v41_v18  ;;  %v75_v25 = vcombine.low %v45_v19, %v49_v20 }
  0x1b   :  { %v76_v26 = vcombine.low %v53_v21, %v57_v22  ;;  %v66_v27 = vrot.slane %v58_v23, %v65_v14 }
  0x1c   :  { %v73_v28 = vrot.slane %v59_v24, %v65_v14  ;;  %v83_v29 = vrot.slane %v75_v25, %v65_v14 }
  0x1d   :  { %v90_v30 = vrot.slane %v76_v26, %v65_v14 }
  0x1e   :  { %v74_v31 = vcombine.low %v66_v27, %v73_v28 }
  0x1f   :  { %v91_v32 = vcombine.low %v83_v29, %v90_v30 }
  0x20   :  { %94 = vst [vmem:[#allocation2] sm:$0xff] %v74_v31 }
  0x21   :  { %95 = vst [vmem:[#allocation2 + $0x8] sm:$0xff] %v91_v32 }
  0x22   :  { %184 = shalt.err (!%p181_p12)  }
  0x23   :  { %s185_s22 = scalar_lea.hbm %s237_s1, 256 }
  0x24   :  { %p186_p13 = scmp.ne.s32.totalorder %s237_s1, %s185_s22  ;;  %p189_p0 = scmp.lt.u32.totalorder %s185_s22, %s237_s1 }
  0x26   :  { %p191_p1 = pnand %p189_p0, %p186_p13 }
  0x28   :  { %194 = shalt.err (!%p191_p1)  }
  0x29   :  { %121 = dma.vmem_to_hbm [thread:$0]  %s119_s18, 256, %s237_s1, [#allocation3] }
  0x2a   :  { %197 = dma.done.wait [#allocation3], 256 }
  0x2b   :  { %198 = vsyncadd [#allocation3], 4294967040 }
  0x2c   :  { %129 = vsyncpa [#allocation5], 1 }
  0x2d   :  { %130 = vsyncmov [#allocation3] }
  0x30   :  { %s131_s29 = vpop.sfrf %130 }
  0x31   :  { %p146_p2 = scmp.ne.s32.totalorder %s131_s29, 0 }
  0x33   :  { %135 = shalt.err (%p146_p2)  }
  0x34   :  { %137 = vsyncmov [#allocation3 + $0x1] }
  0x37   :  { %s138_s30 = vpop.sfrf %137 }
  0x38   :  { %p147_p3 = scmp.ne.s32.totalorder %s138_s30, 0 }
  0x3a   :  { %142 = shalt.err (%p147_p3)  }

</bundles_post_ra>
